<compile_context>
chip_gen: v7x
topology: tpu7x:2x2x1
jax: 0.10.0
libtpu: 0.0.40
codegen_flags: <defaults>
</compile_context>

<pallas_src>
import jax
import jax.numpy as jnp
from jax.experimental import pallas as pl
from jax.experimental.pallas import tpu as pltpu


def _round_up(x, m):
    return (x + m - 1) // m * m


# ----------------------------------------------------------------------------
# Pallas kernel: the whole ensemble forward for TB images == two MXU dots.
# ----------------------------------------------------------------------------
def _multinet_fused_kernel(x_ref, w1_ref, b1_ref, w2_ref, b2_ref, o_ref):
    """Shapes (per grid step, L = TB*H*W lanes):
         x_ref  : (K, L)       bf16  im2col patches (batch folded into lanes)
         w1_ref : (Mpad, K)    bf16  conv1 weights of ALL nets stacked on M
         b1_ref : (Mpad, 1)    f32
         w2_ref : (Rout, Mpad) bf16  ensemble-summed (eval) / block-diag (train)
         b2_ref : (Rout, 1)    f32
         o_ref  : (Rout, L)    f32
    """
    p = x_ref[...]
    # Layer 1 (3x3 conv of every sub-network): one fused im2col matmul.
    h = jnp.dot(w1_ref[...], p, preferred_element_type=jnp.float32)      # (Mpad, L)
    h = jnp.maximum(h + b1_ref[...], 0.0)                                 # bias + ReLU (f32)
    # Layer 2 (1x1 conv of every sub-network, ensemble-fused): one matmul.
    o = jnp.dot(w2_ref[...], h.astype(w2_ref.dtype),
                preferred_element_type=jnp.float32)                       # (Rout, L)
    o_ref[...] = (o + b2_ref[...]).astype(o_ref.dtype)                    # lane-dense store


# ----------------------------------------------------------------------------
# Wrapper-side layout prep (pure data-layout glue, runs once in XLA).
# ----------------------------------------------------------------------------
def _im2col_patches(x_nchw, k_pad):
    """(B, Cin, H, W) f32 -> (k_pad, B*H*W) bf16 im2col patches (pad=1)."""
    B, Cin, H, W = x_nchw.shape
    xp = jnp.pad(x_nchw.astype(jnp.bfloat16), ((0, 0), (0, 0), (1, 1), (1, 1)))
    taps = [xp[:, :, dy:dy + H, dx:dx + W] for dy in range(3) for dx in range(3)]
    p = jnp.stack(taps, axis=0)                 # (9, B, Cin, H, W)
    p = jnp.transpose(p, (0, 2, 1, 3, 4))       # (9, Cin, B, H, W)
    p = p.reshape(9 * Cin, B * H * W)           # K = tap*Cin + cin, lane = b*HW + pix
    return jnp.pad(p, ((0, k_pad - 9 * Cin), (0, 0)))


def _prep_layer1(w1, b1, k_pad):
    """Stack all nets' conv1 params along M.

    w1: (N, 3, 3, Cin, Ch) -> (Mpad, k_pad) bf16  (row = n*Ch + ch,
        col = (dy*3+dx)*Cin + cin — matches the im2col ordering above)
    b1: (N, 1, Ch)         -> (Mpad, 1)     f32
    """
    N, _, _, Cin, Ch = w1.shape
    M = N * Ch
    Mpad = _round_up(M, 8)
    w = jnp.transpose(w1, (0, 4, 1, 2, 3)).reshape(M, 9 * Cin)
    w = jnp.pad(w, ((0, Mpad - M), (0, k_pad - 9 * Cin)))
    b = jnp.transpose(b1, (0, 2, 1)).reshape(M, 1)
    b = jnp.pad(b, ((0, Mpad - M), (0, 0)))
    return w.astype(jnp.bfloat16), b.astype(jnp.float32)


def _prep_layer2_fused(w2, b2, m_pad, scale):
    """Ensemble-sum fusion: sum_n w2_n^T @ h_n == [w2_0^T | ... | w2_{N-1}^T] @ h.

    w2: (N, Ch, Ncls) -> (Ncls, m_pad) bf16 (scaled by `scale`, zero-padded cols)
    b2: (N, 1, Ncls)  -> (Ncls, 1)     f32  (pre-summed over nets, scaled)
    """
    N, Ch, Ncls = w2.shape
    wt = jnp.transpose(w2, (2, 0, 1)).reshape(Ncls, N * Ch)   # col = n*Ch + ch
    wt = jnp.pad(wt, ((0, 0), (0, m_pad - N * Ch))) * scale
    bs = jnp.sum(b2, axis=0).T * scale                        # (Ncls, 1)
    return wt.astype(jnp.bfloat16), bs.astype(jnp.float32)


def _prep_layer2_blockdiag(w2, b2, m_pad):
    """Per-net (training) outputs via a block-diagonal conv2 weight.

    w2: (N, Ch, Ncls) -> (N*Ncls, m_pad) bf16 block-diag; b2 -> (N*Ncls, 1) f32.
    """
    N, Ch, Ncls = w2.shape
    wt = jnp.transpose(w2, (0, 2, 1))                         # (N, Ncls, Ch)
    rows = [jnp.pad(wt[i], ((0, 0), (i * Ch, (N - 1 - i) * Ch))) for i in range(N)]
    bd = jnp.concatenate(rows, axis=0)                        # (N*Ncls, N*Ch)
    bd = jnp.pad(bd, ((0, 0), (0, m_pad - N * Ch)))
    bs = jnp.transpose(b2, (0, 2, 1)).reshape(N * Ncls, 1)
    return bd.astype(jnp.bfloat16), bs.astype(jnp.float32)


def _choose_batch_tile(batch, max_tb=32):
    """Largest batch tile <= max_tb dividing `batch`, preferring >= 2 grid steps
    so both v7x TensorCores get work.  Even at TB=32 the double-buffered blocks
    stay far below v5e's 16 MiB scoped-VMEM default (~1.6 MB total)."""
    divisors = [t for t in range(1, min(batch, max_tb) + 1) if batch % t == 0]
    two_step = [t for t in divisors if batch // t >= 2]
    return max(two_step) if two_step else max(divisors)


def _run_fused(patches, w1s, b1s, w2s, b2s, *, batch, hw, tb):
    """One pallas_call: grid over batch tiles, whole ensemble per step."""
    k = patches.shape[0]
    mpad = w1s.shape[0]
    rout = w2s.shape[0]
    lanes = tb * hw
    return pl.pallas_call(
        _multinet_fused_kernel,
        out_shape=jax.ShapeDtypeStruct((rout, batch * hw), jnp.float32),
        grid=(batch // tb,),
        in_specs=[
            pl.BlockSpec((k, lanes), lambda b: (0, b)),      # patches (batch-blocked lanes)
            pl.BlockSpec((mpad, k), lambda b: (0, 0)),       # stacked conv1 weight (resident)
            pl.BlockSpec((mpad, 1), lambda b: (0, 0)),       # stacked conv1 bias
            pl.BlockSpec((rout, mpad), lambda b: (0, 0)),    # fused / block-diag conv2 weight
            pl.BlockSpec((rout, 1), lambda b: (0, 0)),       # conv2 bias
        ],
        out_specs=pl.BlockSpec((rout, lanes), lambda b: (0, b)),
        compiler_params=pltpu.CompilerParams(
            dimension_semantics=("parallel",),
            # Best effort: let XLA fold the im2col pad/slice/concat producer
            # into the kernel's input DMA instead of a separate HBM round trip.
            allow_input_fusion=(True, False, False, False, False),
        ),
    )(patches, w1s, b1s, w2s, b2s)


def _run_ensemble_eval(x_nchw, w1, b1, w2, b2, *, average):
    """Eval-mode ensemble: (B, Ncls, H, W) f32 (first net or ensemble average)."""
    B, Cin, H, W = x_nchw.shape
    N = w1.shape[0]
    Ncls = w2.shape[-1]
    HW = H * W
    K = _round_up(9 * Cin, 16)                     # bf16 sublane packing

    patches = _im2col_patches(x_nchw, K)
    w1s, b1s = _prep_layer1(w1, b1, K)
    inv = (1.0 / N) if average else 1.0
    w2f, b2f = _prep_layer2_fused(w2, b2, w1s.shape[0], inv)

    tb = _choose_batch_tile(B)
    out = _run_fused(patches, w1s, b1s, w2f, b2f, batch=B, hw=HW, tb=tb)
    # (Ncls, B*HW) -> (B, Ncls, H, W): leading-dim reorder of a few KB in XLA;
    # kept outside the kernel so the in-kernel store stays fully lane-dense.
    return out.reshape(Ncls, B, H, W).transpose(1, 0, 2, 3)


def _run_ensemble_train(x_nchw, w1, b1, w2, b2):
    """Training-mode ensemble: list of per-net (B, Ncls, H, W), ONE kernel launch."""
    B, Cin, H, W = x_nchw.shape
    N = w1.shape[0]
    Ncls = w2.shape[-1]
    HW = H * W
    K = _round_up(9 * Cin, 16)

    patches = _im2col_patches(x_nchw, K)
    w1s, b1s = _prep_layer1(w1, b1, K)
    w2bd, b2s = _prep_layer2_blockdiag(w2, b2, w1s.shape[0])

    tb = _choose_batch_tile(B)
    out = _run_fused(patches, w1s, b1s, w2bd, b2s, batch=B, hw=HW, tb=tb)
    out = out.reshape(N, Ncls, B, H, W).transpose(0, 2, 1, 3, 4)
    return [out[i] for i in range(N)]


def multinet_forward(x_nchw, params, *, infer_mode=0, training=False):
    """Semantics of MultiNet.forward (params = stacked per-net weights)."""
    w1, b1, w2, b2 = params["w1"], params["b1"], params["w2"], params["b2"]
    if training:
        return _run_ensemble_train(x_nchw, w1, b1, w2, b2)
    if infer_mode == 1:
        return _run_ensemble_eval(x_nchw, w1, b1, w2, b2, average=True)
    # infer_mode == 0: only the first network.
    return _run_ensemble_eval(x_nchw, w1[0:1], b1[0:1], w2[0:1], b2[0:1],
                              average=False)


# ----------------------------------------------------------------------------
# Plain-JAX f32 reference (correctness check only).
# ----------------------------------------------------------------------------
def _single_net_ref(x_nchw, w1_i, b1_i, w2_i, b2_i):
    x = jnp.transpose(x_nchw, (0, 2, 3, 1))                 # NHWC
    h = jax.lax.conv_general_dilated(
        x, w1_i, window_strides=(1, 1), padding="SAME",
        dimension_numbers=("NHWC", "HWIO", "NHWC"))
    h = jnp.maximum(h + b1_i.reshape(1, 1, 1, -1), 0.0)
    o = jnp.einsum("bhwc,cn->bhwn", h, w2_i) + b2_i.reshape(1, 1, 1, -1)
    return jnp.transpose(o, (0, 3, 1, 2))                   # NCHW


if __name__ == "__main__":
    # Small deterministic setup: 3 sub-networks in the ensemble.
    B, Cin, H, W = 2, 4, 16, 16
    Ch, Ncls, N_NETS = 8, 2, 3

    key = jax.random.PRNGKey(0)
    k_x, k_w1, k_b1, k_w2, k_b2 = jax.random.split(key, 5)

    x = jax.random.normal(k_x, (B, Cin, H, W), dtype=jnp.float32)
    params = {
        "w1": 0.1 * jax.random.normal(k_w1, (N_NETS, 3, 3, Cin, Ch), jnp.float32),
        "b1": 0.1 * jax.random.normal(k_b1, (N_NETS, 1, Ch), jnp.float32),
        "w2": 0.1 * jax.random.normal(k_w2, (N_NETS, Ch, Ncls), jnp.float32),
        "b2": 0.1 * jax.random.normal(k_b2, (N_NETS, 1, Ncls), jnp.float32),
    }

    # Eval, infer_mode=1 (ensemble average) — fully fused two-dot kernel.
    out_avg = jax.block_until_ready(multinet_forward(x, params, infer_mode=1))
    # Eval, infer_mode=0 (first network only).
    out_first = jax.block_until_ready(multinet_forward(x, params, infer_mode=0))
    # Training mode: list of per-network outputs, still ONE kernel launch.
    outs_train = [jax.block_until_ready(o)
                  for o in multinet_forward(x, params, training=True)]

    # Correctness vs plain-JAX f32 reference (bf16 MXU operands -> relaxed tol).
    refs = [_single_net_ref(x, params["w1"][i], params["b1"][i],
                            params["w2"][i], params["b2"][i])
            for i in range(N_NETS)]
    ref_avg = sum(refs) / N_NETS

    assert out_avg.shape == (B, Ncls, H, W)
    assert out_first.shape == (B, Ncls, H, W)
    assert jnp.allclose(out_avg, ref_avg, atol=3e-2, rtol=3e-2)
    assert jnp.allclose(out_first, refs[0], atol=3e-2, rtol=3e-2)
    assert len(outs_train) == N_NETS
    for o, r in zip(outs_train, refs):
        assert o.shape == (B, Ncls, H, W)
        assert jnp.allclose(o, r, atol=3e-2, rtol=3e-2)

    print("KERNEL_OK")
</pallas_src>

<mosaic_0001>
module attributes {stable_mosaic.version = 11 : i64} {
  func.func @_multinet_fused_kernel(%arg0: i32, %arg1: memref<48x256xbf16, #tpu.memory_space<vmem>>, %arg2: memref<24x48xbf16, #tpu.memory_space<vmem>>, %arg3: memref<24x1xf32, #tpu.memory_space<vmem>>, %arg4: memref<2x24xbf16, #tpu.memory_space<vmem>>, %arg5: memref<2x1xf32, #tpu.memory_space<vmem>>, %arg6: memref<2x256xf32, #tpu.memory_space<vmem>>) attributes {dimension_semantics = [#tpu.dimension_semantics<parallel>], iteration_bounds = array<i64: 2>, scalar_prefetch = 0 : i64, scratch_operands = 0 : i64, tpu.core_type = #tpu.core_type<tc>, window_params = [{transform_indices = @transform_0, window_bounds = array<i64: 48, 256>}, {pipeline_mode = #tpu.pipeline_mode<synchronous>, transform_indices = @transform_1, window_bounds = array<i64: 24, 48>}, {pipeline_mode = #tpu.pipeline_mode<synchronous>, transform_indices = @transform_2, window_bounds = array<i64: 24, 1>}, {pipeline_mode = #tpu.pipeline_mode<synchronous>, transform_indices = @transform_3, window_bounds = array<i64: 2, 24>}, {pipeline_mode = #tpu.pipeline_mode<synchronous>, transform_indices = @transform_4, window_bounds = array<i64: 2, 1>}, {transform_indices = @transform_5, window_bounds = array<i64: 2, 256>}]} {
    %c0 = arith.constant 0 : index
    %c0_0 = arith.constant 0 : index
    %0 = vector.load %arg1[%c0, %c0_0] : memref<48x256xbf16, #tpu.memory_space<vmem>>, vector<48x256xbf16>
    %c0_1 = arith.constant 0 : index
    %c0_2 = arith.constant 0 : index
    %1 = vector.load %arg2[%c0_1, %c0_2] : memref<24x48xbf16, #tpu.memory_space<vmem>>, vector<24x48xbf16>
    %cst = arith.constant dense<0.000000e+00> : vector<24x256xf32>
    %2 = tpu.matmul %1, %0, %cst {dimension_numbers = #tpu.dot_dimension_numbers<[1], [0], [0], [1], [0, 0, 1, 1], [], []>} : vector<24x48xbf16>, vector<48x256xbf16>, vector<24x256xf32> -> vector<24x256xf32>
    %c0_3 = arith.constant 0 : index
    %c0_4 = arith.constant 0 : index
    %3 = vector.load %arg3[%c0_3, %c0_4] : memref<24x1xf32, #tpu.memory_space<vmem>>, vector<24x1xf32>
    %4 = vector.broadcast %3 : vector<24x1xf32> to vector<24x256xf32>
    %5 = arith.addf %2, %4 : vector<24x256xf32>
    %cst_5 = arith.constant 0.000000e+00 : f32
    %6 = vector.broadcast %cst_5 : f32 to vector<24x256xf32>
    %7 = arith.maximumf %5, %6 : vector<24x256xf32>
    %c0_6 = arith.constant 0 : index
    %c0_7 = arith.constant 0 : index
    %8 = vector.load %arg4[%c0_6, %c0_7] : memref<2x24xbf16, #tpu.memory_space<vmem>>, vector<2x24xbf16>
    %9 = arith.truncf %7 : vector<24x256xf32> to vector<24x256xbf16>
    %cst_8 = arith.constant dense<0.000000e+00> : vector<2x256xf32>
    %10 = tpu.matmul %8, %9, %cst_8 {dimension_numbers = #tpu.dot_dimension_numbers<[1], [0], [0], [1], [0, 0, 1, 1], [], []>} : vector<2x24xbf16>, vector<24x256xbf16>, vector<2x256xf32> -> vector<2x256xf32>
    %c0_9 = arith.constant 0 : index
    %c0_10 = arith.constant 0 : index
    %11 = vector.load %arg5[%c0_9, %c0_10] : memref<2x1xf32, #tpu.memory_space<vmem>>, vector<2x1xf32>
    %12 = vector.broadcast %11 : vector<2x1xf32> to vector<2x256xf32>
    %13 = arith.addf %10, %12 : vector<2x256xf32>
    %c0_11 = arith.constant 0 : index
    %c0_12 = arith.constant 0 : index
    %14 = vector.load %arg6[%c0_11, %c0_12] : memref<2x256xf32, #tpu.memory_space<vmem>>, vector<2x256xf32>
    tpu.vector_store %arg6[%c0_11, %c0_12], %13 {strides = array<i32>} : memref<2x256xf32, #tpu.memory_space<vmem>>, vector<2x256xf32>,
    return
  }
  func.func @transform_0(%arg0: i32) -> (i32, i32) {
    %c0_i32 = arith.constant 0 : i32
    %c0_i32_0 = arith.constant 0 : i32
    return %c0_i32, %arg0 : i32, i32
  }
  func.func @transform_1(%arg0: i32) -> (i32, i32) {
    %c0_i32 = arith.constant 0 : i32
    %c0_i32_0 = arith.constant 0 : i32
    %c0_i32_1 = arith.constant 0 : i32
    return %c0_i32, %c0_i32_0 : i32, i32
  }
  func.func @transform_2(%arg0: i32) -> (i32, i32) {
    %c0_i32 = arith.constant 0 : i32
    %c0_i32_0 = arith.constant 0 : i32
    %c0_i32_1 = arith.constant 0 : i32
    return %c0_i32, %c0_i32_0 : i32, i32
  }
  func.func @transform_3(%arg0: i32) -> (i32, i32) {
    %c0_i32 = arith.constant 0 : i32
    %c0_i32_0 = arith.constant 0 : i32
    %c0_i32_1 = arith.constant 0 : i32
    return %c0_i32, %c0_i32_0 : i32, i32
  }
  func.func @transform_4(%arg0: i32) -> (i32, i32) {
    %c0_i32 = arith.constant 0 : i32
    %c0_i32_0 = arith.constant 0 : i32
    %c0_i32_1 = arith.constant 0 : i32
    return %c0_i32, %c0_i32_0 : i32, i32
  }
  func.func @transform_5(%arg0: i32) -> (i32, i32) {
    %c0_i32 = arith.constant 0 : i32
    %c0_i32_0 = arith.constant 0 : i32
    return %c0_i32, %arg0 : i32, i32
  }
}

</mosaic_0001>

<bundles_post_ra>
// kernel: tpu_custom_call.1
= control target key start
LH: loop header
LB: loop body
LE: loop exit
PB: predicated region body
PF: predicated region fallthrough
CT: control target
= control target key end

     0   :  { %10 = vsyncpa [#allocation3], 0  ;;  %s939_s0 = inlined_call_operand.hbm [shape: bf16[48,512], index: 0, kind: input, shape index: {}]   ;;  %s940_s1 = inlined_call_operand.vmem [shape: bf16[24,48], index: 1, kind: input, shape index: {}]   ;;  %s941_s2 = inlined_call_operand.vmem [shape: f32[24,1], index: 2, kind: input, shape index: {}]   ;;  %s942_s3 = inlined_call_operand.vmem [shape: bf16[2,24], index: 3, kind: input, shape index: {}]   ;;  %s943_s4 = inlined_call_operand.vmem [shape: f32[2,1], index: 4, kind: input, shape index: {}]   ;;  %s944_s5 = inlined_call_operand.hbm [shape: f32[2,512], index: 5, kind: output, shape index: {}]  }
   0x1   :  { %12 = vsyncpa [#allocation3 + $0x1], 0 }
   0x2   :  { %13 = vsyncpa [#allocation4], 0 }
   0x3   :  { %15 = vsyncpa [#allocation4 + $0x1], 0  ;;  %s761_s18 = smov 0   ;;  %s763_s19 = smov 0  }
   0x4   :  { %s765_s20 = smov 0   ;;  %s767_s21 = smov 0  }
   0x5 LB: > { %s782_s22 = sadd.s32 4294967295, %s723_s21   ;;  %s535_s23 = sadd.s32 4294967294, %s723_s21   ;;  %s723_s21 = sphi %s767_s21, %s957_s21   ;;  %s719_s20 = sphi %s765_s20, %s956_s20   ;;  %s715_s19 = sphi %s763_s19, %s955_s19   ;;  %s711_s18 = sphi %s761_s18, %s954_s18  }
   0x6   : > { %s786_s24 = sadd.s32 1, %s723_s21   ;;  %s28_s25 = sadd.s32 1, %s719_s20 }
   0x7   : > { %s25_s26 = ssub.s32 %s723_s21, %s786_s24  ;;  %p35_p0 = scmp.ne.s32.totalorder %s719_s20, %s715_s19 }
   0x8   : > { %p26_p1 = scmp.eq.s32.totalorder %s25_s26, 0  ;;  %p36_p2 = scmp.eq.s32.totalorder %s723_s21, 0 }
   0x9   : > { %p41_p3 = scmp.ne.s32.totalorder %s715_s19, %s711_s18  ;;  %p42_p4 = scmp.eq.s32.totalorder %s782_s22, 0 }
   0xa   : > { %s798_s27 = scalar_select %p26_p1, %s719_s20, %s28_s25  }
   0xb   : > { %p37_p5 = por %p36_p2, %p35_p0  ;;  %p800_p6 = por %p42_p4, %p41_p3 }
   0xc   : > { %p149_p7 = scmp.eq.s32.totalorder %s782_s22, 1  ;;  %p155_p8 = scmp.eq.s32.totalorder %s535_s23, 1 }
   0xd   : > { %p576_p10 = scmp.lt.s32.totalorder %s723_s21, 2  ;;  %s187_s6 = sand.u32 1, %s719_s20  }
   0xe   : > { %p807_p11 = por %p149_p7, %p35_p0  ;;  %p811_p12 = por %p155_p8, %p41_p3 }
   0xf   : > { %s560_s7 = sshll.u32 %s723_s21, 7  ;;  %s562_s8 = smul.u32 48, %s187_s6 }
  0x10   : > { %s947_s29 = scalar_select %p807_p11, 1, 0 }
  0x11   : > { %s948_s30 = scalar_select %p811_p12, 1, 0 }
  0x12   : > { %s820_s11 = scalar_lea.hbm %s939_s0, %s560_s7  ;;  %p822_p13 = pnand %p576_p10, %p37_p5 }
  0x13   : > { %s191_s13 = scalar_lea.vmem [#allocation2], %s562_s8  ;;  %s829_s15 = scalar_lea.sflag [#allocation3], %s187_s6 }
  0x14   : > { %s198_s14 = sshll.u32 %s191_s13, 4  ;;  %s627_s16 = scalar_lea.hbm %s820_s11, 768  ;;  %s826_s14 = int_to_ptr.vmem [resolvable:$true] %s198_s14 }
  0x15   : > { %p628_p1 = scmp.ne.s32.totalorder %s820_s11, %s627_s16  ;;  %p629_p2 = pneg %p822_p13 }
  0x16   : > { %s632_s25 = scalar_lea.hbm %s939_s0, 1536  ;;  %p633_p5 = scmp.lt.u32.totalorder %s820_s11, %s939_s0 }
  0x17   : > { %p630_p3 = pnand %p629_p2, %p628_p1  ;;  %p634_p7 = scmp.lt.u32.totalorder %s632_s25, %s627_s16 }
  0x18   : > { %p636_p10 = scmp.lt.u32.totalorder %s627_s16, %s820_s11 }
  0x19   : > { %p631_p4 = pneg %p630_p3  ;;  %p635_p8 = por %p634_p7, %p633_p5 }
  0x1b   : > { %p637_p9 = por %p636_p10, %p635_p8 }
  0x1d   : > { %p638_p0 = pnand %p637_p9, %p631_p4 }
  0x1f   : > { %641 = shalt.err (!%p638_p0)
}
  0x20   : > { %s642_s6 = scalar_lea.vmem %s826_s14, 768  ;;  %s725_s8 = smov [#allocation2]  }
  0x21   : > { %p643_p1 = scmp.ne.s32.totalorder %s826_s14, %s642_s6  ;;  %s647_s9 = sshll.u32 %s725_s8, 4  ;;  %s648_s9 = int_to_ptr.vmem [resolvable:$false] %s647_s9 }
  0x22   : > { %s649_s10 = scalar_lea.vmem %s648_s9, 1536  ;;  %p650_p11 = scmp.lt.s32.totalorder %s826_s14, %s648_s9 }
  0x23   : > { %p645_p3 = pnand %p643_p1, %p629_p2  ;;  %p651_p5 = scmp.lt.s32.totalorder %s649_s10, %s642_s6 }
  0x25   : > { %p646_p12 = pneg %p645_p3  ;;  %p652_p7 = por %p651_p5, %p650_p11 }
  0x27   : > { %p653_p8 = pnand %p652_p7, %p646_p12 }
  0x29   : > { %656 = shalt.err (!%p653_p8)
}
  0x2a   : > { %s726_s13 = smov 256   ;;  %s727_s16 = smov 128  }
  0x2b   : > { %s728_s17 = smov 8   ;;  %p206_p9 = scmp.lt.s32.totalorder %s723_s21, 3 }
  0x2c   : > { %571 = dma.hbm_to_vmem [thread:$0]  (!%p822_p13), %s820_s11, 768, %s826_s14, %s829_s15, %s726_s13, %s727_s16, %s728_s17  }
  0x2d   : > { %p950_p0 = scmp.ge.s32.totalorder %s723_s21, 1 }
  0x2f   : > { %p207_p2 = pnand %p950_p0, %p206_p9 }
  0x30   : > { %s861_s23 = sand.u32 (!%p207_p2), 1, %s715_s19  }
  0x31   : > { %210 = sbr.rel (%p207_p2) target bundleno = 534 (0x216), region = 40  ;;  %s213_s26 = scalar_lea.sflag (!%p207_p2), [#allocation3], %s861_s23 }
  0x32   : > { %s563_s25 = smul.u32 (!%p207_p2), 48, %s861_s23 }
  0x34   : > { %s216_s7 = scalar_lea.vmem (!%p207_p2), [#allocation2], %s563_s25 }
  0x38   : > { %702 = dma.done.wait (%p800_p6), %s213_s26, 768  }
  0x39   : > { %704 = vsyncadd (%p800_p6), %s213_s26, 4294966528  ;;  %v729_v0 = vmov 0   ;;  %v616_v1 = vld [vmem:[%s216_s7 + $0x4] ss:$8 sps:$4 sm:$0xff]   ;;  %v618_v2 = vld [vmem:[%s216_s7] ss:$8 sps:$4 sm:$0xff]  }
  0x3a   : > { %350 = vmatprep.mubr.bf16.mxu0 %v729_v0  ;;  %614 = vset.pattern.permute.xlu0 %v729_v0  ;;  %v619_v3 = vld [vmem:[%s216_s7 + $0x14] ss:$8 sps:$4 sm:$0xff]   ;;  %v621_v4 = vld [vmem:[%s216_s7 + $0x10] ss:$8 sps:$4 sm:$0xff]   ;;  %v622_v5 = vld [vmem:[%s216_s7 + $0x24] ss:$8 sps:$4 sm:$0xff]  }
  0x3b   : > { %615 = vset.pattern.permute.xlu1 %v729_v0  ;;  %429 = vmatprep.mubr.bf16.mxu1 %v729_v0  ;;  %v255_v6 = vld [vmem:[%s941_s2] sm:$0xff]  ;;  %v257_v7 = vld [vmem:[%s941_s2 + $0x10] sm:$0xff]  ;;  %v256_v9 = vld [vmem:[%s941_s2 + $0x8] sm:$0xff]  ;;  %vm311_vm0 = vcmask 392192   ;;  %vm390_vm1 = vcmask 1043456   ;;  %vm386_vm2 = vcmask 195584  }
  0x3c   : > { %318 = vmatprep.subr.bf16.mxu0 %v616_v1  ;;  %260 = vperm.xlu0 %614, %v255_v6   ;;  %v624_v8 = vld [vmem:[%s216_s7 + $0x20] ss:$8 sps:$4 sm:$0xff]   ;;  %s541_s7 = sshll.u32 %s861_s23, 2  ;;  %s561_s11 = sshll.u32 %s782_s22, 6 }
  0x3d   : > { %319 = vmatpush1.bf16.msra.mxu0 %v618_v2  ;;  %270 = vperm.xlu1 %615, %v257_v7   ;;  %v380_v10 = vld [vmem:[%s943_s4] sm:$0x3]  ;;  %v626_v12 = vld [vmem:[%s940_s1 + $0x8] ss:$0 sps:$4 sm:$0xff]   ;;  %s242_s12 = scalar_lea.vmem [#allocation5], %s541_s7  ;;  %s895_s6 = scalar_lea.hbm %s944_s5, %s561_s11 }
  0x3e   : > { %320 = vmatprep.subr.bf16.mxu0 %v619_v3  ;;  %v625_v11 = vld [vmem:[%s940_s1] sm:$0xff]   ;;  %s465_s28 = sshll.u32 %s242_s12, 4  ;;  %s451_s8 = scalar_lea.sflag [#allocation4], %s861_s23  ;;  %s897_s28 = int_to_ptr.vmem [resolvable:$true] %s465_s28 }
  0x3f   : > { %v375_v41 = vld [vmem:[%s942_s3] sm:$0x1]  ;;  %s657_s9 = scalar_lea.vmem %s897_s28, 64  ;;  %p951_p11 = scmp.ne.s32.totalorder %s947_s29, 0 }
  0x40   : > { %265 = vperm.xlu0 %614, %v256_v9   ;;  %p658_p6 = scmp.ne.s32.totalorder %s897_s28, %s657_s9  ;;  %s730_s22 = smov [#allocation5]  }
  0x41   : > { %321 = vmatpush1.bf16.msra.mxu0 %v621_v4  ;;  %383 = vperm.xlu1 %615, %v380_v10   ;;  %s661_s10 = sshll.u32 %s730_s22, 4  ;;  %s662_s10 = int_to_ptr.vmem [resolvable:$false] %s661_s10 }
  0x42   : > { %322 = vmatprep.subr.bf16.mxu0 %v622_v5  ;;  %p659_p12 = pnand %p658_p6, %p951_p11  ;;  %s663_s13 = scalar_lea.vmem %s662_s10, 128 }
  0x43   : > { %p664_p4 = scmp.lt.s32.totalorder %s897_s28, %s662_s10  ;;  %p665_p10 = scmp.lt.s32.totalorder %s663_s13, %s657_s9 }
  0x44   : > { %p660_p13 = pneg %p659_p12 }
  0x45   : > { %323 = vmatpush1.bf16.msra.mxu0 %v624_v8  ;;  %p666_p1 = por %p665_p10, %p664_p4 }
  0x47   : > { %p667_p3 = pnand %p666_p1, %p660_p13 }
  0x48   : > { %550 = vmatmul.mubr.msk.bf16.vlgmr.msra.gmra.mrb[0].mxu0 %vm311_vm0, %v625_v11 }
  0x49   : > { %360 = vmatprep.mubr.bf16.mxu0 %v729_v0 }
  0x50   : > { %551 = vmatmul.mubr.msk.bf16.gmra.mrb[4].mxu0 %vm311_vm0, %v626_v12 }
  0xbb   : > { %v261_v13 = vpop.permute.xlu0 %260 }
  0xbc   : > { %v271_v28 = vpop.permute.xlu1 %270 }
  0xbf   : > { %v266_v15 = vpop.permute.xlu0 %265 }
  0xc0   : > { %v384_v42 = vpop.permute.xlu1 %383 }
 0x11b   : > { %v352_v14 = vpop.f32.mrb[0].mxu0 }
 0x11c   : > { %v353_v16 = vadd.f32 %v352_v14, %v261_v13  ;;  %v354_v17 = vpop.f32.mrb[1].mxu0 }
 0x11d   : > { %v355_v18 = vadd.f32 %v354_v17, %v261_v13  ;;  %v356_v19 = vpop.f32.mrb[2].mxu0 }
 0x11e   : > { %v357_v20 = vadd.f32 %v356_v19, %v266_v15  ;;  %v358_v21 = vpop.f32.mrb[3].mxu0  ;;  %v369_v23 = vmax.f32 %v353_v16, 0.0 }
 0x11f   : > { %v359_v22 = vadd.f32 %v358_v21, %v266_v15  ;;  %v370_v25 = vmax.f32 %v355_v18, 0.0 }
 0x120   : > { %v371_v24 = vmax.f32 %v357_v20, 0.0 }
 0x121   : > { %v372_v26 = vmax.f32 %v359_v22, 0.0 }
 0x122   : > { %v376_v27 = vpack.c.bf16 %v371_v24, %v369_v23 }
 0x123   : > { %v362_v29 = vpop.f32.mrb[4].mxu0  ;;  %v377_v30 = vpack.c.bf16 %v372_v26, %v370_v25 }
 0x124   : > { %v363_v31 = vadd.f32 %v362_v29, %v271_v28  ;;  %v364_v32 = vpop.f32.mrb[5].mxu0 }
 0x125   : > { %v365_v33 = vadd.f32 %v364_v32, %v271_v28  ;;  %v366_v34 = vpop.f32.mrb[6].mxu0  ;;  %397 = vmatprep.subr.bf16.mxu1 %v377_v30 }
 0x126   : > { %v373_v35 = vmax.f32 %v363_v31, 0.0  ;;  %v367_v36 = vpop.f32.mrb[7].mxu0  ;;  %398 = vmatpush1.bf16.msra.mxu1 %v376_v27 }
 0x127   : > { %v374_v37 = vmax.f32 %v365_v33, 0.0 }
 0x128   : > { %v378_v38 = vpack.c.bf16 %v373_v35, %v373_v35 }
 0x129   : > { %v379_v39 = vpack.c.bf16 %v374_v37, %v374_v37 }
 0x12a   : > { %v392_v40 = vsel %vm390_vm1, %v378_v38, 0 }
 0x12b   : > { %552 = vmatprep.subr.msk.bf16.mxu1 %vm390_vm1, %v379_v39 }
 0x12c   : > { %400 = vmatpush1.bf16.msra.mxu1 %v392_v40 }
 0x12f   : > { %553 = vmatmul.mubr.msk.bf16.vlgmr.msra.gmra.mrb[0].mxu1 %vm386_vm2, %v375_v41 }
 0x202   : > { %v431_v43 = vpop.f32.mrb[0].mxu1 }
 0x203   : > { %v432_v44 = vadd.f32 %v431_v43, %v384_v42  ;;  %v433_v45 = vpop.f32.mrb[1].mxu1 }
 0x204   : > { %v434_v46 = vadd.f32 %v433_v45, %v384_v42  ;;  %v435_v47 = vpop.f32.mrb[2].mxu1 }
 0x205   : > { %v436_v48 = vpop.f32.mrb[3].mxu1 }
 0x206   : > { %v440_v49 = vcombine.low %v432_v44, %v434_v46 }
 0x208   : > { %554 = vst.sshfl [vmem:[%s242_s12] sm:$0x33 pattern:$0x76325410] %v440_v49 }
 0x209   : > { %670 = shalt.err (!%p667_p3)
}
 0x20a   : > { %s671_s23 = scalar_lea.hbm %s895_s6, 64  ;;  %s675_s25 = scalar_lea.hbm %s944_s5, 128 }
 0x20b   : > { %p672_p5 = scmp.ne.s32.totalorder %s895_s6, %s671_s23  ;;  %p676_p9 = scmp.lt.u32.totalorder %s895_s6, %s944_s5 }
 0x20c   : > { %p677_p0 = scmp.lt.u32.totalorder %s675_s25, %s671_s23  ;;  %p679_p6 = scmp.lt.u32.totalorder %s671_s23, %s895_s6 }
 0x20d   : > { %p673_p7 = pnand %p672_p5, %p951_p11 }
 0x20e   : > { %p678_p2 = por %p677_p0, %p676_p9 }
 0x20f   : > { %p674_p8 = pneg %p673_p7 }
 0x210   : > { %p680_p12 = por %p679_p6, %p678_p2 }
 0x212   : > { %p681_p13 = pnand %p680_p12, %p674_p8 }
 0x214   : > { %684 = shalt.err (!%p681_p13)
}
 0x215   : > { %566 = dma.vmem_to_hbm [thread:$0]  (%p951_p11), %s897_s28, 64, %s895_s6, %s451_s8  }
 0x216 PF: > { %s477_s11 = sand.u32 1, %s711_s18   ;;  %p952_p4 = scmp.ne.s32.totalorder %s948_s30, 0 }
 0x217   : > { %p953_p10 = scmp.ge.s32.totalorder %s723_s21, 2  ;;  %s478_s12 = scalar_lea.sflag [#allocation4], %s477_s11 }
 0x219   : > { %p573_p1 = pnand %p953_p10, %p952_p4 }
 0x21b   : > { %706 = dma.done.wait (!%p573_p1), %s478_s12, 64  }
 0x21c   : > { %708 = vsyncadd (!%p573_p1), %s478_s12, 4294967232  ;;  %p18_p3 = scmp.ge.s32.totalorder %s786_s24, 4   ;;  %s954_s18 = smov %s715_s19 }
 0x21d   : > { %s955_s19 = smov %s719_s20  ;;  %s956_s20 = smov %s798_s27 }
 0x21e   : > { %s957_s21 = smov %s786_s24  ;;  %20 = sbr.rel (!%p18_p3) target bundleno = 5 (0x5), region = 85 }
 0x225   :  { %483 = vsyncpa [#allocation3], 1 }
 0x226   :  { %485 = vsyncpa [#allocation3 + $0x1], 1 }
 0x227   :  { %486 = vsyncpa [#allocation4], 1 }
 0x228   :  { %488 = vsyncpa [#allocation4 + $0x1], 1 }

</bundles_post_ra>
